<compile_context>
chip_gen: v7x
topology: tpu7x:2x2x1
jax: 0.10.0
libtpu: 0.0.40
codegen_flags: <defaults>
</compile_context>

<pallas_src>
import math
from functools import partial

import jax
import jax.numpy as jnp
from jax.experimental import pallas as pl
from jax.experimental.pallas import tpu as pltpu

D = 32          # embedding_dim
H = 4           # attention heads
DK = D // H     # per-head dim
DFF = 64        # feed-forward hidden width
LN_EPS = 1e-5   # nn.LayerNorm default eps
NEG_INF = 1e9   # additive mask magnitude


def _layernorm(x, g, b):
    mu = jnp.mean(x, axis=-1, keepdims=True)
    var = jnp.mean(jnp.square(x - mu), axis=-1, keepdims=True)
    return (x - mu) * jax.lax.rsqrt(var + LN_EPS) * g + b


def _encoder_layer_kernel(x_ref, mask_ref, wqkv_ref, wo_ref, w1_ref, w2_ref,
                          vec_ref, o_ref, *, batch, seq):
    """Fused EncoderLayer forward.

    x_ref    : (batch*seq, D)   activations, flattened for 2-D matmuls
    mask_ref : (batch, seq)     1.0 = attend / 0.0 = masked key position
    wqkv_ref : (D, 3*D)         fused Q|K|V projection weight
    wo_ref   : (D, D)           attention output projection
    w1_ref   : (D, DFF), w2_ref : (DFF, D)   position-wise FFN
    vec_ref  : (8, 128)         packed small vectors (LN params + all biases)
    """
    bs = batch * seq
    x = x_ref[...].astype(jnp.float32)                          # (BS, D)

    # --- unpack the small-vector slab (one tile, one DMA) ---
    vec = vec_ref[...]
    g1, b1n = vec[0:1, :D], vec[1:2, :D]
    g2, b2n = vec[2:3, :D], vec[3:4, :D]
    b_qkv = vec[4:5, :3 * D]
    bo = vec[5:6, :D]
    b1f = vec[6:7, :DFF]
    b2f = vec[7:8, :D]

    # ---- sublayer 1: LN1(x + MHA(LN1(x))) ----
    xn = _layernorm(x, g1, b1n)
    qkv = jnp.dot(xn, wqkv_ref[...],
                  preferred_element_type=jnp.float32) + b_qkv   # (BS, 3D)

    # Fold heads into the batch axis: (BS, D) -> (H*B, S, DK), batch index = h*B + b.
    def heads(t):
        return jnp.concatenate(
            [t[:, h * DK:(h + 1) * DK].reshape(batch, seq, DK) for h in range(H)],
            axis=0)

    q = heads(qkv[:, 0:D])
    k = heads(qkv[:, D:2 * D])
    v = heads(qkv[:, 2 * D:3 * D])

    # Additive mask bias tiled over heads: (H*B, 1, S).
    neg = (mask_ref[...].astype(jnp.float32) - 1.0) * NEG_INF   # (B, S)
    bias = jnp.tile(neg, (H, 1))[:, None, :]                    # (H*B, 1, S)

    s = jnp.einsum('bqd,bkd->bqk', q, k,
                   preferred_element_type=jnp.float32)          # (H*B, S, S)
    s = s * (1.0 / math.sqrt(DK)) + bias
    s = s - jnp.max(s, axis=-1, keepdims=True)
    p = jnp.exp(s)
    p = p * pl.reciprocal(jnp.sum(p, axis=-1, keepdims=True), approx=True)
    ctx = jnp.einsum('bqk,bkd->bqd', p, v,
                     preferred_element_type=jnp.float32)        # (H*B, S, DK)

    attn = jnp.concatenate(
        [ctx[h * batch:(h + 1) * batch].reshape(bs, DK) for h in range(H)],
        axis=-1)                                                # (BS, D)
    attn = jnp.dot(attn, wo_ref[...],
                   preferred_element_type=jnp.float32) + bo
    x1 = _layernorm(x + attn, g1, b1n)

    # ---- sublayer 2: LN2(x1 + FFN(LN2(x1))) ----
    xn2 = _layernorm(x1, g2, b2n)
    h1 = jnp.maximum(
        jnp.dot(xn2, w1_ref[...], preferred_element_type=jnp.float32) + b1f, 0.0)
    ff = jnp.dot(h1, w2_ref[...], preferred_element_type=jnp.float32) + b2f
    o_ref[...] = _layernorm(x1 + ff, g2, b2n).astype(o_ref.dtype)


def encoder_layer_forward(x, mask, params):
    b, s, d = x.shape
    assert d == D
    x2 = x.reshape(b * s, d)            # free reshape -> sublane-filled 2-D matmuls
    kernel = partial(_encoder_layer_kernel, batch=b, seq=s)
    vmem = pl.BlockSpec(memory_space=pltpu.MemorySpace.VMEM)
    out = pl.pallas_call(
        kernel,
        out_shape=jax.ShapeDtypeStruct((b * s, d), x.dtype),
        in_specs=[vmem] * 7,
        out_specs=vmem,
    )(x2, mask, params['w_qkv'], params['wo'], params['w1'], params['w2'],
      params['vec'])
    return out.reshape(b, s, d)


# ---------------- deterministic parameter construction ----------------
def _init_linear(key, fan_in, fan_out):
    # PyTorch nn.Linear default init: U(-1/sqrt(fan_in), 1/sqrt(fan_in))
    k1, k2 = jax.random.split(key)
    bound = 1.0 / math.sqrt(fan_in)
    w = jax.random.uniform(k1, (fan_in, fan_out), jnp.float32, -bound, bound)
    bias = jax.random.uniform(k2, (fan_out,), jnp.float32, -bound, bound)
    return w, bias


def make_params(key):
    keys = jax.random.split(key, 6)
    wq, bq = _init_linear(keys[0], D, D)
    wk, bk = _init_linear(keys[1], D, D)
    wv, bv = _init_linear(keys[2], D, D)
    wo, bo = _init_linear(keys[3], D, D)
    w1, b1f = _init_linear(keys[4], D, DFF)
    w2, b2f = _init_linear(keys[5], DFF, D)

    # nn.LayerNorm init: weight=1, bias=0 (two SubLayerConnections -> two norms).
    g1 = jnp.ones((D,), jnp.float32)
    b1n = jnp.zeros((D,), jnp.float32)
    g2 = jnp.ones((D,), jnp.float32)
    b2n = jnp.zeros((D,), jnp.float32)

    w_qkv = jnp.concatenate([wq, wk, wv], axis=1)          # (D, 3D)
    b_qkv = jnp.concatenate([bq, bk, bv], axis=0)          # (3D,)

    # Pack all small vectors into one (8, 128) tile -> a single DMA descriptor.
    vec = jnp.zeros((8, 128), jnp.float32)
    vec = vec.at[0, :D].set(g1).at[1, :D].set(b1n)
    vec = vec.at[2, :D].set(g2).at[3, :D].set(b2n)
    vec = vec.at[4, :3 * D].set(b_qkv).at[5, :D].set(bo)
    vec = vec.at[6, :DFF].set(b1f).at[7, :D].set(b2f)

    return dict(w_qkv=w_qkv, wo=wo, w1=w1, w2=w2, vec=vec)


if __name__ == "__main__":
    B, S = 2, 8
    key = jax.random.PRNGKey(0)
    kx, kp = jax.random.split(key)

    x = jax.random.normal(kx, (B, S, D), jnp.float32)
    mask = jnp.ones((B, S), jnp.float32).at[1, 6:].set(0.0)  # mask last 2 keys of batch 1

    params = make_params(kp)
    # TODO(synk): nn.Dropout is treated as eval-mode identity (no stochastic dropout).
    out = encoder_layer_forward(x, mask, params)
    jax.block_until_ready(out)
    assert out.shape == (B, S, D)
    assert bool(jnp.all(jnp.isfinite(out)))
    print("KERNEL_OK")
</pallas_src>

<mosaic_0001>
module attributes {stable_mosaic.version = 11 : i64} {
  func.func @_encoder_layer_kernel(%arg0: memref<16x32xf32, #tpu.memory_space<vmem>>, %arg1: memref<2x8xf32, #tpu.memory_space<vmem>>, %arg2: memref<32x96xf32, #tpu.memory_space<vmem>>, %arg3: memref<32x32xf32, #tpu.memory_space<vmem>>, %arg4: memref<32x64xf32, #tpu.memory_space<vmem>>, %arg5: memref<64x32xf32, #tpu.memory_space<vmem>>, %arg6: memref<8x128xf32, #tpu.memory_space<vmem>>, %arg7: memref<16x32xf32, #tpu.memory_space<vmem>>) attributes {dimension_semantics = [], scalar_prefetch = 0 : i64, scratch_operands = 0 : i64, tpu.core_type = #tpu.core_type<tc>} {
    %c0 = arith.constant 0 : index
    %c0_0 = arith.constant 0 : index
    %0 = vector.load %arg0[%c0, %c0_0] : memref<16x32xf32, #tpu.memory_space<vmem>>, vector<16x32xf32>
    %c0_1 = arith.constant 0 : index
    %c0_2 = arith.constant 0 : index
    %1 = vector.load %arg6[%c0_1, %c0_2] : memref<8x128xf32, #tpu.memory_space<vmem>>, vector<8x128xf32>
    %2 = vector.extract_strided_slice %1 {offsets = [0, 0], sizes = [1, 32], strides = [1, 1]} : vector<8x128xf32> to vector<1x32xf32>
    %3 = vector.extract_strided_slice %1 {offsets = [1, 0], sizes = [1, 32], strides = [1, 1]} : vector<8x128xf32> to vector<1x32xf32>
    %4 = vector.extract_strided_slice %1 {offsets = [2, 0], sizes = [1, 32], strides = [1, 1]} : vector<8x128xf32> to vector<1x32xf32>
    %5 = vector.extract_strided_slice %1 {offsets = [3, 0], sizes = [1, 32], strides = [1, 1]} : vector<8x128xf32> to vector<1x32xf32>
    %6 = vector.extract_strided_slice %1 {offsets = [4, 0], sizes = [1, 96], strides = [1, 1]} : vector<8x128xf32> to vector<1x96xf32>
    %7 = vector.extract_strided_slice %1 {offsets = [5, 0], sizes = [1, 32], strides = [1, 1]} : vector<8x128xf32> to vector<1x32xf32>
    %8 = vector.extract_strided_slice %1 {offsets = [6, 0], sizes = [1, 64], strides = [1, 1]} : vector<8x128xf32> to vector<1x64xf32>
    %9 = vector.extract_strided_slice %1 {offsets = [7, 0], sizes = [1, 32], strides = [1, 1]} : vector<8x128xf32> to vector<1x32xf32>
    %cst = arith.constant dense<0.000000e+00> : vector<16xf32>
    %10 = vector.multi_reduction <add>, %0, %cst [1] : vector<16x32xf32> to vector<16xf32>
    %11 = vector.shape_cast %10 : vector<16xf32> to vector<16x1xf32>
    %cst_3 = arith.constant 3.200000e+01 : f32
    %12 = vector.broadcast %cst_3 : f32 to vector<16x1xf32>
    %13 = arith.divf %11, %12 : vector<16x1xf32>
    %14 = vector.broadcast %13 : vector<16x1xf32> to vector<16x32xf32>
    %15 = arith.subf %0, %14 : vector<16x32xf32>
    %16 = arith.mulf %15, %15 : vector<16x32xf32>
    %cst_4 = arith.constant dense<0.000000e+00> : vector<16xf32>
    %17 = vector.multi_reduction <add>, %16, %cst_4 [1] : vector<16x32xf32> to vector<16xf32>
    %18 = vector.shape_cast %17 : vector<16xf32> to vector<16x1xf32>
    %cst_5 = arith.constant 3.200000e+01 : f32
    %19 = vector.broadcast %cst_5 : f32 to vector<16x1xf32>
    %20 = arith.divf %18, %19 : vector<16x1xf32>
    %21 = vector.broadcast %13 : vector<16x1xf32> to vector<16x32xf32>
    %22 = arith.subf %0, %21 : vector<16x32xf32>
    %cst_6 = arith.constant 9.99999974E-6 : f32
    %23 = vector.broadcast %cst_6 : f32 to vector<16x1xf32>
    %24 = arith.addf %20, %23 : vector<16x1xf32>
    %25 = math.rsqrt %24 : vector<16x1xf32>
    %26 = vector.broadcast %25 : vector<16x1xf32> to vector<16x32xf32>
    %27 = arith.mulf %22, %26 : vector<16x32xf32>
    %28 = vector.broadcast %2 : vector<1x32xf32> to vector<16x32xf32>
    %29 = arith.mulf %27, %28 : vector<16x32xf32>
    %30 = vector.broadcast %3 : vector<1x32xf32> to vector<16x32xf32>
    %31 = arith.addf %29, %30 : vector<16x32xf32>
    %c0_7 = arith.constant 0 : index
    %c0_8 = arith.constant 0 : index
    %32 = vector.load %arg2[%c0_7, %c0_8] : memref<32x96xf32, #tpu.memory_space<vmem>>, vector<32x96xf32>
    %cst_9 = arith.constant dense<0.000000e+00> : vector<16x96xf32>
    %33 = tpu.matmul %31, %32, %cst_9 {dimension_numbers = #tpu.dot_dimension_numbers<[1], [0], [0], [1], [0, 0, 1, 1], [], []>} : vector<16x32xf32>, vector<32x96xf32>, vector<16x96xf32> -> vector<16x96xf32>
    %34 = vector.broadcast %6 : vector<1x96xf32> to vector<16x96xf32>
    %35 = arith.addf %33, %34 : vector<16x96xf32>
    %36 = vector.extract_strided_slice %35 {offsets = [0, 0], sizes = [16, 32], strides = [1, 1]} : vector<16x96xf32> to vector<16x32xf32>
    %37 = vector.extract_strided_slice %36 {offsets = [0, 0], sizes = [16, 8], strides = [1, 1]} : vector<16x32xf32> to vector<16x8xf32>
    %38 = vector.shape_cast %37 : vector<16x8xf32> to vector<2x8x8xf32>
    %39 = vector.extract_strided_slice %36 {offsets = [0, 8], sizes = [16, 8], strides = [1, 1]} : vector<16x32xf32> to vector<16x8xf32>
    %40 = vector.shape_cast %39 : vector<16x8xf32> to vector<2x8x8xf32>
    %41 = vector.extract_strided_slice %36 {offsets = [0, 16], sizes = [16, 8], strides = [1, 1]} : vector<16x32xf32> to vector<16x8xf32>
    %42 = vector.shape_cast %41 : vector<16x8xf32> to vector<2x8x8xf32>
    %43 = vector.extract_strided_slice %36 {offsets = [0, 24], sizes = [16, 8], strides = [1, 1]} : vector<16x32xf32> to vector<16x8xf32>
    %44 = vector.shape_cast %43 : vector<16x8xf32> to vector<2x8x8xf32>
    %45 = tpu.concatenate %38, %40, %42, %44 in 0 : vector<2x8x8xf32>, vector<2x8x8xf32>, vector<2x8x8xf32>, vector<2x8x8xf32> -> vector<8x8x8xf32>
    %46 = vector.extract_strided_slice %35 {offsets = [0, 32], sizes = [16, 32], strides = [1, 1]} : vector<16x96xf32> to vector<16x32xf32>
    %47 = vector.extract_strided_slice %46 {offsets = [0, 0], sizes = [16, 8], strides = [1, 1]} : vector<16x32xf32> to vector<16x8xf32>
    %48 = vector.shape_cast %47 : vector<16x8xf32> to vector<2x8x8xf32>
    %49 = vector.extract_strided_slice %46 {offsets = [0, 8], sizes = [16, 8], strides = [1, 1]} : vector<16x32xf32> to vector<16x8xf32>
    %50 = vector.shape_cast %49 : vector<16x8xf32> to vector<2x8x8xf32>
    %51 = vector.extract_strided_slice %46 {offsets = [0, 16], sizes = [16, 8], strides = [1, 1]} : vector<16x32xf32> to vector<16x8xf32>
    %52 = vector.shape_cast %51 : vector<16x8xf32> to vector<2x8x8xf32>
    %53 = vector.extract_strided_slice %46 {offsets = [0, 24], sizes = [16, 8], strides = [1, 1]} : vector<16x32xf32> to vector<16x8xf32>
    %54 = vector.shape_cast %53 : vector<16x8xf32> to vector<2x8x8xf32>
    %55 = tpu.concatenate %48, %50, %52, %54 in 0 : vector<2x8x8xf32>, vector<2x8x8xf32>, vector<2x8x8xf32>, vector<2x8x8xf32> -> vector<8x8x8xf32>
    %56 = vector.extract_strided_slice %35 {offsets = [0, 64], sizes = [16, 32], strides = [1, 1]} : vector<16x96xf32> to vector<16x32xf32>
    %57 = vector.extract_strided_slice %56 {offsets = [0, 0], sizes = [16, 8], strides = [1, 1]} : vector<16x32xf32> to vector<16x8xf32>
    %58 = vector.shape_cast %57 : vector<16x8xf32> to vector<2x8x8xf32>
    %59 = vector.extract_strided_slice %56 {offsets = [0, 8], sizes = [16, 8], strides = [1, 1]} : vector<16x32xf32> to vector<16x8xf32>
    %60 = vector.shape_cast %59 : vector<16x8xf32> to vector<2x8x8xf32>
    %61 = vector.extract_strided_slice %56 {offsets = [0, 16], sizes = [16, 8], strides = [1, 1]} : vector<16x32xf32> to vector<16x8xf32>
    %62 = vector.shape_cast %61 : vector<16x8xf32> to vector<2x8x8xf32>
    %63 = vector.extract_strided_slice %56 {offsets = [0, 24], sizes = [16, 8], strides = [1, 1]} : vector<16x32xf32> to vector<16x8xf32>
    %64 = vector.shape_cast %63 : vector<16x8xf32> to vector<2x8x8xf32>
    %65 = tpu.concatenate %58, %60, %62, %64 in 0 : vector<2x8x8xf32>, vector<2x8x8xf32>, vector<2x8x8xf32>, vector<2x8x8xf32> -> vector<8x8x8xf32>
    %c0_10 = arith.constant 0 : index
    %c0_11 = arith.constant 0 : index
    %66 = vector.load %arg1[%c0_10, %c0_11] : memref<2x8xf32, #tpu.memory_space<vmem>>, vector<2x8xf32>
    %cst_12 = arith.constant 1.000000e+00 : f32
    %67 = vector.broadcast %cst_12 : f32 to vector<2x8xf32>
    %68 = arith.subf %66, %67 : vector<2x8xf32>
    %cst_13 = arith.constant 1.000000e+09 : f32
    %69 = vector.broadcast %cst_13 : f32 to vector<2x8xf32>
    %70 = arith.mulf %68, %69 : vector<2x8xf32>
    %71 = tpu.concatenate %70, %70, %70, %70 in 0 : vector<2x8xf32>, vector<2x8xf32>, vector<2x8xf32>, vector<2x8xf32> -> vector<8x8xf32>
    %72 = vector.shape_cast %71 : vector<8x8xf32> to vector<8x1x8xf32>
    "tpu.trace_start"() <{level = 10 : i32, message = "bqd,bkd->bqk"}> : () -> ()
    %cst_14 = arith.constant dense<0.000000e+00> : vector<8x8x8xf32>
    %73 = tpu.matmul %45, %55, %cst_14 {dimension_numbers = #tpu.dot_dimension_numbers<[2], [2], [1], [1], [0, 0, 0, 1, 1, 1], [0], [0]>} : vector<8x8x8xf32>, vector<8x8x8xf32>, vector<8x8x8xf32> -> vector<8x8x8xf32>
    "tpu.trace_stop"() : () -> ()
    %cst_15 = arith.constant 0.353553385 : f32
    %74 = vector.broadcast %cst_15 : f32 to vector<8x8x8xf32>
    %75 = arith.mulf %73, %74 : vector<8x8x8xf32>
    %76 = vector.broadcast %72 : vector<8x1x8xf32> to vector<8x8x8xf32>
    %77 = arith.addf %75, %76 : vector<8x8x8xf32>
    %cst_16 = arith.constant dense<0xFF800000> : vector<8x8xf32>
    %78 = vector.multi_reduction <maximumf>, %77, %cst_16 [2] : vector<8x8x8xf32> to vector<8x8xf32>
    %79 = vector.shape_cast %78 : vector<8x8xf32> to vector<8x8x1xf32>
    %80 = vector.broadcast %79 : vector<8x8x1xf32> to vector<8x8x8xf32>
    %81 = arith.subf %77, %80 : vector<8x8x8xf32>
    %82 = math.exp %81 : vector<8x8x8xf32>
    %cst_17 = arith.constant dense<0.000000e+00> : vector<8x8xf32>
    %83 = vector.multi_reduction <add>, %82, %cst_17 [2] : vector<8x8x8xf32> to vector<8x8xf32>
    %84 = vector.shape_cast %83 : vector<8x8xf32> to vector<8x8x1xf32>
    %85 = tpu.reciprocal %84 {approx = true} : vector<8x8x1xf32> -> vector<8x8x1xf32>
    %86 = vector.broadcast %85 : vector<8x8x1xf32> to vector<8x8x8xf32>
    %87 = arith.mulf %82, %86 : vector<8x8x8xf32>
    "tpu.trace_start"() <{level = 10 : i32, message = "bqk,bkd->bqd"}> : () -> ()
    %cst_18 = arith.constant dense<0.000000e+00> : vector<8x8x8xf32>
    %88 = tpu.matmul %87, %65, %cst_18 {dimension_numbers = #tpu.dot_dimension_numbers<[2], [1], [1], [2], [0, 0, 0, 1, 1, 2], [0], [0]>} : vector<8x8x8xf32>, vector<8x8x8xf32>, vector<8x8x8xf32> -> vector<8x8x8xf32>
    "tpu.trace_stop"() : () -> ()
    %89 = vector.extract_strided_slice %88 {offsets = [0, 0, 0], sizes = [2, 8, 8], strides = [1, 1, 1]} : vector<8x8x8xf32> to vector<2x8x8xf32>
    %90 = vector.shape_cast %89 : vector<2x8x8xf32> to vector<16x8xf32>
    %91 = vector.extract_strided_slice %88 {offsets = [2, 0, 0], sizes = [2, 8, 8], strides = [1, 1, 1]} : vector<8x8x8xf32> to vector<2x8x8xf32>
    %92 = vector.shape_cast %91 : vector<2x8x8xf32> to vector<16x8xf32>
    %93 = vector.extract_strided_slice %88 {offsets = [4, 0, 0], sizes = [2, 8, 8], strides = [1, 1, 1]} : vector<8x8x8xf32> to vector<2x8x8xf32>
    %94 = vector.shape_cast %93 : vector<2x8x8xf32> to vector<16x8xf32>
    %95 = vector.extract_strided_slice %88 {offsets = [6, 0, 0], sizes = [2, 8, 8], strides = [1, 1, 1]} : vector<8x8x8xf32> to vector<2x8x8xf32>
    %96 = vector.shape_cast %95 : vector<2x8x8xf32> to vector<16x8xf32>
    %97 = tpu.concatenate %90, %92, %94, %96 in 1 : vector<16x8xf32>, vector<16x8xf32>, vector<16x8xf32>, vector<16x8xf32> -> vector<16x32xf32>
    %c0_19 = arith.constant 0 : index
    %c0_20 = arith.constant 0 : index
    %98 = vector.load %arg3[%c0_19, %c0_20] : memref<32x32xf32, #tpu.memory_space<vmem>>, vector<32x32xf32>
    %cst_21 = arith.constant dense<0.000000e+00> : vector<16x32xf32>
    %99 = tpu.matmul %97, %98, %cst_21 {dimension_numbers = #tpu.dot_dimension_numbers<[1], [0], [0], [1], [0, 0, 1, 1], [], []>} : vector<16x32xf32>, vector<32x32xf32>, vector<16x32xf32> -> vector<16x32xf32>
    %100 = vector.broadcast %7 : vector<1x32xf32> to vector<16x32xf32>
    %101 = arith.addf %99, %100 : vector<16x32xf32>
    %102 = arith.addf %0, %101 : vector<16x32xf32>
    %cst_22 = arith.constant dense<0.000000e+00> : vector<16xf32>
    %103 = vector.multi_reduction <add>, %102, %cst_22 [1] : vector<16x32xf32> to vector<16xf32>
    %104 = vector.shape_cast %103 : vector<16xf32> to vector<16x1xf32>
    %cst_23 = arith.constant 3.200000e+01 : f32
    %105 = vector.broadcast %cst_23 : f32 to vector<16x1xf32>
    %106 = arith.divf %104, %105 : vector<16x1xf32>
    %107 = vector.broadcast %106 : vector<16x1xf32> to vector<16x32xf32>
    %108 = arith.subf %102, %107 : vector<16x32xf32>
    %109 = arith.mulf %108, %108 : vector<16x32xf32>
    %cst_24 = arith.constant dense<0.000000e+00> : vector<16xf32>
    %110 = vector.multi_reduction <add>, %109, %cst_24 [1] : vector<16x32xf32> to vector<16xf32>
    %111 = vector.shape_cast %110 : vector<16xf32> to vector<16x1xf32>
    %cst_25 = arith.constant 3.200000e+01 : f32
    %112 = vector.broadcast %cst_25 : f32 to vector<16x1xf32>
    %113 = arith.divf %111, %112 : vector<16x1xf32>
    %114 = vector.broadcast %106 : vector<16x1xf32> to vector<16x32xf32>
    %115 = arith.subf %102, %114 : vector<16x32xf32>
    %cst_26 = arith.constant 9.99999974E-6 : f32
    %116 = vector.broadcast %cst_26 : f32 to vector<16x1xf32>
    %117 = arith.addf %113, %116 : vector<16x1xf32>
    %118 = math.rsqrt %117 : vector<16x1xf32>
    %119 = vector.broadcast %118 : vector<16x1xf32> to vector<16x32xf32>
    %120 = arith.mulf %115, %119 : vector<16x32xf32>
    %121 = vector.broadcast %2 : vector<1x32xf32> to vector<16x32xf32>
    %122 = arith.mulf %120, %121 : vector<16x32xf32>
    %123 = vector.broadcast %3 : vector<1x32xf32> to vector<16x32xf32>
    %124 = arith.addf %122, %123 : vector<16x32xf32>
    %cst_27 = arith.constant dense<0.000000e+00> : vector<16xf32>
    %125 = vector.multi_reduction <add>, %124, %cst_27 [1] : vector<16x32xf32> to vector<16xf32>
    %126 = vector.shape_cast %125 : vector<16xf32> to vector<16x1xf32>
    %cst_28 = arith.constant 3.200000e+01 : f32
    %127 = vector.broadcast %cst_28 : f32 to vector<16x1xf32>
    %128 = arith.divf %126, %127 : vector<16x1xf32>
    %129 = vector.broadcast %128 : vector<16x1xf32> to vector<16x32xf32>
    %130 = arith.subf %124, %129 : vector<16x32xf32>
    %131 = arith.mulf %130, %130 : vector<16x32xf32>
    %cst_29 = arith.constant dense<0.000000e+00> : vector<16xf32>
    %132 = vector.multi_reduction <add>, %131, %cst_29 [1] : vector<16x32xf32> to vector<16xf32>
    %133 = vector.shape_cast %132 : vector<16xf32> to vector<16x1xf32>
    %cst_30 = arith.constant 3.200000e+01 : f32
    %134 = vector.broadcast %cst_30 : f32 to vector<16x1xf32>
    %135 = arith.divf %133, %134 : vector<16x1xf32>
    %136 = vector.broadcast %128 : vector<16x1xf32> to vector<16x32xf32>
    %137 = arith.subf %124, %136 : vector<16x32xf32>
    %cst_31 = arith.constant 9.99999974E-6 : f32
    %138 = vector.broadcast %cst_31 : f32 to vector<16x1xf32>
    %139 = arith.addf %135, %138 : vector<16x1xf32>
    %140 = math.rsqrt %139 : vector<16x1xf32>
    %141 = vector.broadcast %140 : vector<16x1xf32> to vector<16x32xf32>
    %142 = arith.mulf %137, %141 : vector<16x32xf32>
    %143 = vector.broadcast %4 : vector<1x32xf32> to vector<16x32xf32>
    %144 = arith.mulf %142, %143 : vector<16x32xf32>
    %145 = vector.broadcast %5 : vector<1x32xf32> to vector<16x32xf32>
    %146 = arith.addf %144, %145 : vector<16x32xf32>
    %c0_32 = arith.constant 0 : index
    %c0_33 = arith.constant 0 : index
    %147 = vector.load %arg4[%c0_32, %c0_33] : memref<32x64xf32, #tpu.memory_space<vmem>>, vector<32x64xf32>
    %cst_34 = arith.constant dense<0.000000e+00> : vector<16x64xf32>
    %148 = tpu.matmul %146, %147, %cst_34 {dimension_numbers = #tpu.dot_dimension_numbers<[1], [0], [0], [1], [0, 0, 1, 1], [], []>} : vector<16x32xf32>, vector<32x64xf32>, vector<16x64xf32> -> vector<16x64xf32>
    %149 = vector.broadcast %8 : vector<1x64xf32> to vector<16x64xf32>
    %150 = arith.addf %148, %149 : vector<16x64xf32>
    %cst_35 = arith.constant 0.000000e+00 : f32
    %151 = vector.broadcast %cst_35 : f32 to vector<16x64xf32>
    %152 = arith.maximumf %150, %151 : vector<16x64xf32>
    %c0_36 = arith.constant 0 : index
    %c0_37 = arith.constant 0 : index
    %153 = vector.load %arg5[%c0_36, %c0_37] : memref<64x32xf32, #tpu.memory_space<vmem>>, vector<64x32xf32>
    %cst_38 = arith.constant dense<0.000000e+00> : vector<16x32xf32>
    %154 = tpu.matmul %152, %153, %cst_38 {dimension_numbers = #tpu.dot_dimension_numbers<[1], [0], [0], [1], [0, 0, 1, 1], [], []>} : vector<16x64xf32>, vector<64x32xf32>, vector<16x32xf32> -> vector<16x32xf32>
    %155 = vector.broadcast %9 : vector<1x32xf32> to vector<16x32xf32>
    %156 = arith.addf %154, %155 : vector<16x32xf32>
    %157 = arith.addf %124, %156 : vector<16x32xf32>
    %cst_39 = arith.constant dense<0.000000e+00> : vector<16xf32>
    %158 = vector.multi_reduction <add>, %157, %cst_39 [1] : vector<16x32xf32> to vector<16xf32>
    %159 = vector.shape_cast %158 : vector<16xf32> to vector<16x1xf32>
    %cst_40 = arith.constant 3.200000e+01 : f32
    %160 = vector.broadcast %cst_40 : f32 to vector<16x1xf32>
    %161 = arith.divf %159, %160 : vector<16x1xf32>
    %162 = vector.broadcast %161 : vector<16x1xf32> to vector<16x32xf32>
    %163 = arith.subf %157, %162 : vector<16x32xf32>
    %164 = arith.mulf %163, %163 : vector<16x32xf32>
    %cst_41 = arith.constant dense<0.000000e+00> : vector<16xf32>
    %165 = vector.multi_reduction <add>, %164, %cst_41 [1] : vector<16x32xf32> to vector<16xf32>
    %166 = vector.shape_cast %165 : vector<16xf32> to vector<16x1xf32>
    %cst_42 = arith.constant 3.200000e+01 : f32
    %167 = vector.broadcast %cst_42 : f32 to vector<16x1xf32>
    %168 = arith.divf %166, %167 : vector<16x1xf32>
    %169 = vector.broadcast %161 : vector<16x1xf32> to vector<16x32xf32>
    %170 = arith.subf %157, %169 : vector<16x32xf32>
    %cst_43 = arith.constant 9.99999974E-6 : f32
    %171 = vector.broadcast %cst_43 : f32 to vector<16x1xf32>
    %172 = arith.addf %168, %171 : vector<16x1xf32>
    %173 = math.rsqrt %172 : vector<16x1xf32>
    %174 = vector.broadcast %173 : vector<16x1xf32> to vector<16x32xf32>
    %175 = arith.mulf %170, %174 : vector<16x32xf32>
    %176 = vector.broadcast %4 : vector<1x32xf32> to vector<16x32xf32>
    %177 = arith.mulf %175, %176 : vector<16x32xf32>
    %178 = vector.broadcast %5 : vector<1x32xf32> to vector<16x32xf32>
    %179 = arith.addf %177, %178 : vector<16x32xf32>
    %c0_44 = arith.constant 0 : index
    %c0_45 = arith.constant 0 : index
    %180 = vector.load %arg7[%c0_44, %c0_45] : memref<16x32xf32, #tpu.memory_space<vmem>>, vector<16x32xf32>
    tpu.vector_store %arg7[%c0_44, %c0_45], %179 {strides = array<i32>} : memref<16x32xf32, #tpu.memory_space<vmem>>, vector<16x32xf32>,
    return
  }
}

</mosaic_0001>

<bundles_post_ra>
// kernel: tpu_custom_call.1
= control target key start
LH: loop header
LB: loop body
LE: loop exit
PB: predicated region body
PF: predicated region fallthrough
CT: control target
= control target key end

     0   :  { %12 = vsyncpa [#allocation3], 0  ;;  %s2836_s0 = inlined_call_operand.hbm [shape: f32[16,32], index: 0, kind: input, shape index: {}]   ;;  %s2837_s1 = inlined_call_operand.vmem [shape: f32[2,8], index: 1, kind: input, shape index: {}]   ;;  %s2838_s2 = inlined_call_operand.vmem [shape: f32[32,96], index: 2, kind: input, shape index: {}]   ;;  %s2839_s3 = inlined_call_operand.vmem [shape: f32[32,32], index: 3, kind: input, shape index: {}]   ;;  %s2840_s4 = inlined_call_operand.vmem [shape: f32[32,64], index: 4, kind: input, shape index: {}]   ;;  %s2841_s5 = inlined_call_operand.vmem [shape: f32[64,32], index: 5, kind: input, shape index: {}]   ;;  %s2842_s6 = inlined_call_operand.vmem [shape: f32[8,128], index: 6, kind: input, shape index: {}]   ;;  %s2843_s7 = inlined_call_operand.hbm [shape: f32[16,32], index: 7, kind: output, shape index: {}]  }
   0x1   :  { %13 = vsyncpa [#allocation4], 0  ;;  %s2416_s24 = smov [#allocation2]   ;;  %s2368_s28 = scalar_lea.hbm %s2836_s0, 256 }
   0x2   :  { %s19_s25 = sshll.u32 %s2416_s24, 4  ;;  %p2369_p0 = scmp.ne.s32.totalorder %s2836_s0, %s2368_s28  ;;  %s20_s25 = int_to_ptr.vmem [resolvable:$true] %s19_s25 }
   0x3   :  { %p2372_p1 = scmp.lt.u32.totalorder %s2368_s28, %s2836_s0 }
   0x5   :  { %p2374_p2 = pnand %p2372_p1, %p2369_p0 }
   0x7   :  { %2377 = shalt.err (!%p2374_p2)
}
   0x8   :  { %s2378_s10 = scalar_lea.vmem %s20_s25, 256  ;;  %p2383_p4 = scmp.lt.s32.totalorder %s20_s25, %s20_s25 }
   0x9   :  { %p2379_p3 = scmp.ne.s32.totalorder %s20_s25, %s2378_s10  ;;  %p2384_p5 = scmp.lt.s32.totalorder %s2378_s10, %s2378_s10 }
   0xb   :  { %p2385_p6 = por %p2384_p5, %p2383_p4 }
   0xd   :  { %p2386_p7 = pnand %p2385_p6, %p2379_p3 }
   0xf   :  { %2389 = shalt.err (!%p2386_p7)
}
  0x10   :  { %s2417_s11 = smov 128   ;;  %s2418_s12 = smov 8  }
  0x11   :  { %25 = dma.hbm_to_vmem [thread:$0]  %s2836_s0, 256, %s20_s25, [#allocation3], %s2417_s11, %s2417_s11, %s2418_s12  }
  0x12   :  { %2412 = dma.done.wait [#allocation3], 256  }
  0x13   :  { %2413 = vsyncadd [#allocation3], 4294967040  ;;  %vm44_vm0 = vcmask 261120   ;;  %v2485_v0 = vld [vmem:[#allocation2] sm:$0xff]  ;;  %v2487_v1 = vld [vmem:[#allocation2 + $0x8] sm:$0xff]  ;;  %v72_v22 = vlaneseq  ;;  %v2419_v43 = vmov 0.0  }
  0x14   :  { %v45_v2 = vsel %vm44_vm0, %v2485_v0, 0.0  ;;  %v48_v3 = vsel %vm44_vm0, %v2487_v1, 0.0  ;;  %v84_v14 = vld [vmem:[%s2838_s2] sm:$0xff]  ;;  %v85_v15 = vld [vmem:[%s2838_s2 + $0x8] sm:$0xff]  ;;  %v86_v16 = vld [vmem:[%s2838_s2 + $0x10] sm:$0xff]  ;;  %2155 = vmatprep.subr.mxu0 %v2419_v43  ;;  %vm2420_vm1 = vmmov 0  }
  0x15   :  { %46 = vadd.xlane.f32.xlu0 %v45_v2  ;;  %v2266_v17 = vpack.c.bf16 %v85_v15, %v84_v14  ;;  %v87_v18 = vld [vmem:[%s2838_s2 + $0x18] sm:$0xff]  ;;  %v2509_v26 = vshrl.u32 %v72_v22, 7  ;;  %v2517_v29 = vld [vmem:[%s2842_s6] sm:$0xff]  ;;  %2157 = vmatprep.mubr.msk.f32.mxu0 %vm2420_vm1, %v2419_v43  ;;  %s2421_s6 = smov 120   ;;  %s2422_s23 = smov 112   ;;  %vm255_vm2 = vcmask 64512  }
  0x16   :  { %v2270_v19 = vpack.c.bf16 %v87_v18, %v86_v16  ;;  %s2423_s24 = smov 104   ;;  %s2424_s25 = smov 96   ;;  %v187_v62 = vld [vmem:[%s2837_s1] sm:$0x3]  ;;  %vm197_vm3 = vcmask 1041408   ;;  %vm199_vm4 = vcmask 1043456  }
  0x17   :  { %2267 = vmatprep.subr.bf16.mxu1 %v2266_v17  ;;  %v2512_v28 = vsub.s32 0, %v2509_v26  ;;  %v80_v30 = vsub.s32 1, %v2509_v26  ;;  %v90_v41 = vsub.s32 4, %v2509_v26  ;;  %v2043_v63 = vadd.f32 -1.0, %v187_v62  ;;  %s2426_s1 = smov 64   ;;  %s2427_s0 = smov 16  }
  0x18   :  { %2269 = vmatpush3.bf16.msra.mxu1 %v2266_v17  ;;  %vm201_vm5 = vcmask 1045504   ;;  %vm1640_vm6 = vcmask 130048   ;;  %vm1643_vm7 = vcmask 195584   ;;  %vm1908_vm8 = vcmask 523264  }
  0x19   :  { %49 = vadd.xlane.f32.xlu0 %v48_v3  ;;  %2271 = vmatprep.subr.bf16.mxu1 %v2270_v19  ;;  %v2522_v31 = vrot.slane %v2517_v29, %v2512_v28  ;;  %v2525_v34 = vrot.slane %v2517_v29, %v80_v30  ;;  %v91_v42 = vrot.slane %v2517_v29, %v90_v41  ;;  %v189_v2 = vmul.f32 1e+09, %v2043_v63 }
  0x1b   :  { %v191_v3 = vrot.slane %v189_v2, 6 }
  0x1c   :  { %2273 = vmatpush3.bf16.msra.mxu1 %v2270_v19 }
  0x1d   :  { %2145 = vmatprep.subr.mxu1 %v2419_v43 }
  0xa2   :  { %v47_v4 = vpop.xlane.xlu0 %46 }
  0xa3   :  { %v52_v5 = vmul.f32 0.03125, %v47_v4  ;;  %v2425_v4 = vmov 1966171168  }
  0xa5   :  { %v54_v6 = vsub.f32 %v2485_v0, %v52_v5  ;;  %v206_v5 = vunpack.c.l.s4 %v2425_v4 }
  0xa6   :  { %v50_v7 = vpop.xlane.xlu0 %49 }
  0xa7   :  { %v53_v8 = vmul.f32 0.03125, %v50_v7  ;;  %v56_v9 = vmul.f32 %v54_v6, %v54_v6  ;;  %v198_v7 = vsel %vm197_vm3, %v189_v2, %v191_v3 }
  0xa9   :  { %v55_v10 = vsub.f32 %v2487_v1, %v53_v8  ;;  %v58_v11 = vsel %vm44_vm0, %v56_v9, 0.0  ;;  %v207_v8 = vunpack.c.0.s8 %v206_v5  ;;  %v195_v9 = vrot.slane %v189_v2, 2 }
  0xaa   :  { %59 = vadd.xlane.f32.xlu1 %v58_v11 }
  0xab   :  { %v57_v12 = vmul.f32 %v55_v10, %v55_v10  ;;  %v210_v11 = vsub.s32 %v207_v8, %v2509_v26 }
  0xad   :  { %v61_v13 = vsel %vm44_vm0, %v57_v12, 0.0 }
  0xae   :  { %62 = vadd.xlane.f32.xlu1 %v61_v13 }
 0x137   :  { %v60_v20 = vpop.xlane.xlu1 %59 }
 0x138   :  { %v64_v21 = vmul.f32 0.03125, %v60_v20 }
 0x13a   :  { %v66_v23 = vadd.f32 1e-05, %v64_v21 }
 0x13b   :  { %v63_v24 = vpop.xlane.xlu1 %62 }
 0x13c   :  { %2320 = vrsqrt.f32 %v66_v23  ;;  %v65_v25 = vmul.f32 0.03125, %v63_v24 }
 0x13e   :  { %v67_v27 = vadd.f32 1e-05, %v65_v25 }
 0x140   :  { %2322 = vrsqrt.f32 %v67_v27 }
 0x146   :  { %v2321_v32 = vpop.eup %2320 }
 0x147   :  { %v70_v33 = vmul.f32 %v2321_v32, %v54_v6  ;;  %v193_v6 = vrot.slane %v189_v2, 4 }
 0x149   :  { %v76_v35 = vmul.f32 %v2522_v31, %v70_v33 }
 0x14a   :  { %v2323_v36 = vpop.eup %2322 }
 0x14b   :  { %v82_v37 = vadd.f32 %v2525_v34, %v76_v35  ;;  %v71_v38 = vmul.f32 %v2323_v36, %v55_v10  ;;  %v200_v10 = vsel %vm199_vm4, %v198_v7, %v193_v6 }
 0x14c   :  { %v202_v12 = vsel %vm201_vm5, %v200_v10, %v195_v9 }
 0x14d   :  { %2142 = vmatprep.mubr.msk.f32.mxu1 %vm44_vm0, %v82_v37  ;;  %v77_v39 = vmul.f32 %v2522_v31, %v71_v38  ;;  %v211_v13 = vrot.slane %v202_v12, %v210_v11  ;;  %v204_v33 = vcombine.high %v202_v12, %v202_v12 }
 0x14f   :  { %v83_v40 = vadd.f32 %v2525_v34, %v77_v39  ;;  %v227_v14 = vrot.slane %v211_v13, %v210_v11  ;;  %v219_v15 = vcombine.high %v211_v13, %v211_v13  ;;  %v218_v36 = vrot.slane %v204_v33, %v210_v11 }
 0x151   :  { %2143 = vmatmul.mubr.msk.f32.vlgmr.msra.gmra.mrb[0].mxu1 %vm44_vm0, %v83_v40  ;;  %v873_v16 = vrot.slane %v227_v14, %v2512_v28  ;;  %v241_v20 = vrot.slane %v219_v15, %v210_v11  ;;  %v249_v37 = vcombine.high %v227_v14, %v227_v14  ;;  %v220_v39 = vcombine.high %v218_v36, %v218_v36 }
 0x152   :  { %2147 = vmatprep.mubr.msk.f32.mxu1 %vm2420_vm1, %v2419_v43  ;;  %v234_v41 = vrot.slane %v218_v36, %v210_v11 }
 0x153   :  { %v877_v23 = vrot.slane %v241_v20, %v2512_v28  ;;  %v251_v35 = vcombine.high %v241_v20, %v241_v20 }
 0x155   :  { %v885_v38 = vrot.slane %v251_v35, %v2512_v28 }
 0x224   :  { %v2144_v44 = vpop.f32.mrb[0].mxu1 }
 0x225   :  { %v2541_v45 = vadd.f32 %v2144_v44, %v91_v42  ;;  %v164_v46 = vpop.f32.mrb[1].mxu1 }
 0x226   :  { %v2543_v47 = vadd.f32 %v164_v46, %v91_v42 }
 0x227   :  { %177 = vrot.lane.b32.xlu1 %v2541_v45, %s2421_s6 }
 0x228   :  { %175 = vrot.lane.b32.xlu0 %v2543_v47, %s2421_s6 }
 0x22b   :  { %179 = vrot.lane.b32.xlu1 %v2543_v47, %s2422_s23 }
 0x22c   :  { %183 = vrot.lane.b32.xlu0 %v2543_v47, %s2423_s24 }
 0x22f   :  { %181 = vrot.lane.b32.xlu1 %v2541_v45, %s2422_s23 }
 0x230   :  { %253 = vrot.lane.b32.xlu0 %v2543_v47, %s2424_s25 }
 0x233   :  { %185 = vrot.lane.b32.xlu1 %v2541_v45, %s2423_s24 }
 0x237   :  { %330 = vrot.lane.b32.xlu1 %v2541_v45, %s2424_s25 }
 0x299   :  { %v2553_v48 = vpop.permute.xlu1 %177 }
 0x29a   :  { %482 = vrot.lane.b32.xlu1 %v2553_v48, %s2424_s25  ;;  %v2556_v49 = vpop.permute.xlu0 %175 }
 0x29b   :  { %406 = vrot.lane.b32.xlu0 %v2556_v49, %s2424_s25 }
 0x29d   :  { %v2559_v50 = vpop.permute.xlu1 %179 }
 0x29e   :  { %v2561_v51 = vpop.permute.xlu0 %183 }
 0x29f   :  { %558 = vrot.lane.b32.xlu0 %v2559_v50, %s2424_s25 }
 0x2a1   :  { %v2564_v52 = vpop.permute.xlu1 %181 }
 0x2a2   :  { %634 = vrot.lane.b32.xlu1 %v2564_v52, %s2424_s25  ;;  %v254_v53 = vpop.permute.xlu0 %253 }
 0x2a3   :  { %710 = vrot.lane.b32.xlu0 %v2561_v51, %s2424_s25  ;;  %2146 = vmatpush3.xpose.msk.msra.mxu1 %vm255_vm2, %v254_v53  ;;  %v881_v53 = vrot.slane %v249_v37, %v2512_v28 }
 0x2a4   :  { %2150 = vmatprep.subr.mxu1 %v2419_v43 }
 0x2a5   :  { %v2570_v54 = vpop.permute.xlu1 %185 }
 0x2a6   :  { %786 = vrot.lane.b32.xlu1 %v2570_v54, %s2424_s25  ;;  %2148 = vmatmul.mubr.msk.f32.vlgmr.msra.gmra.mrb[2].mxu1 %vm255_vm2, %v2543_v47 }
 0x2a7   :  { %2152 = vmatprep.mubr.msk.f32.mxu1 %vm2420_vm1, %v2419_v43 }
 0x2a9   :  { %v331_v55 = vpop.permute.xlu1 %330 }
 0x2aa   :  { %2151 = vmatpush3.xpose.msk.msra.mxu1 %vm255_vm2, %v331_v55 }
 0x2ab   :  { %2160 = vmatprep.subr.mxu1 %v2419_v43 }
 0x2ad   :  { %2153 = vmatmul.mubr.msk.f32.vlgmr.msra.gmra.mrb[4].mxu1 %vm255_vm2, %v2541_v45 }
 0x2ae   :  { %2162 = vmatprep.mubr.msk.f32.mxu1 %vm2420_vm1, %v2419_v43 }
 0x30c   :  { %v483_v56 = vpop.permute.xlu1 %482 }
 0x30d   :  { %2161 = vmatpush3.xpose.msk.msra.mxu1 %vm255_vm2, %v483_v56  ;;  %v407_v57 = vpop.permute.xlu0 %406 }
 0x30e   :  { %2156 = vmatpush3.xpose.msk.msra.mxu0 %vm255_vm2, %v407_v57  ;;  %2170 = vmatprep.subr.mxu1 %v2419_v43 }
 0x30f   :  { %2165 = vmatprep.subr.mxu0 %v2419_v43 }
 0x310   :  { %2163 = vmatmul.mubr.msk.f32.vlgmr.msra.gmra.mrb[6].mxu1 %vm255_vm2, %v2553_v48 }
 0x311   :  { %2158 = vmatmul.mubr.msk.f32.vlgmr.msra.gmra.mrb[0].mxu0 %vm255_vm2, %v2556_v49  ;;  %v559_v58 = vpop.permute.xlu0 %558  ;;  %2172 = vmatprep.mubr.msk.f32.mxu1 %vm2420_vm1, %v2419_v43 }
 0x312   :  { %2166 = vmatpush3.xpose.msk.msra.mxu0 %vm255_vm2, %v559_v58  ;;  %2167 = vmatprep.mubr.msk.f32.mxu0 %vm2420_vm1, %v2419_v43  ;;  %v248_v58 = vrot.slane %v220_v39, %v210_v11 }
 0x313   :  { %2175 = vmatprep.subr.mxu0 %v2419_v43 }
 0x314   :  { %v635_v59 = vpop.permute.xlu1 %634  ;;  %v893_v4 = vrot.slane %v248_v58, %v2512_v28  ;;  %v252_v5 = vcombine.high %v248_v58, %v248_v58 }
 0x315   :  { %2168 = vmatmul.mubr.msk.f32.vlgmr.msra.gmra.mrb[2].mxu0 %vm255_vm2, %v2559_v50  ;;  %2171 = vmatpush3.xpose.msk.msra.mxu1 %vm255_vm2, %v635_v59  ;;  %v711_v60 = vpop.permute.xlu0 %710  ;;  %v889_v59 = vrot.slane %v234_v41, %v2512_v28 }
 0x316   :  { %2176 = vmatpush3.xpose.msk.msra.mxu0 %vm255_vm2, %v711_v60  ;;  %2177 = vmatprep.mubr.msk.f32.mxu0 %vm2420_vm1, %v2419_v43  ;;  %v250_v60 = vcombine.high %v234_v41, %v234_v41 }
 0x317   :  { %2180 = vmatprep.subr.mxu1 %v2419_v43  ;;  %2185 = vmatprep.subr.mxu0 %v2419_v43 }
 0x318   :  { %v787_v61 = vpop.permute.xlu1 %786  ;;  %2173 = vmatmul.mubr.msk.f32.vlgmr.msra.gmra.mrb[8].mxu1 %vm255_vm2, %v2564_v52  ;;  %v897_v8 = vrot.slane %v250_v60, %v2512_v28 }
 0x319   :  { %2178 = vmatmul.mubr.msk.f32.vlgmr.msra.gmra.mrb[4].mxu0 %vm255_vm2, %v2561_v51  ;;  %2181 = vmatpush3.xpose.msk.msra.mxu1 %vm255_vm2, %v787_v61 }
 0x31a   :  { %2182 = vmatprep.mubr.msk.f32.mxu1 %vm2420_vm1, %v2419_v43  ;;  %2190 = vmatprep.subr.mxu1 %v2419_v43 }
 0x31b   :  { %2187 = vmatprep.mubr.msk.f32.mxu0 %vm2420_vm1, %v2419_v43 }
 0x31c   :  { %2183 = vmatmul.mubr.msk.f32.vlgmr.msra.gmra.mrb[10].mxu1 %vm255_vm2, %v2570_v54 }
 0x31d   :  { %2192 = vmatprep.mubr.msk.f32.mxu1 %vm2420_vm1, %v2419_v43 }
 0x379   :  { %v326_v17 = vpop.f32.mrb[2].mxu1 }
 0x37a   :  { %v862_v18 = vmul.f32 0.35355338, %v326_v17  ;;  %v2149_v19 = vpop.f32.mrb[3].mxu1 }
 0x37c   :  { %v2624_v21 = vadd.f32 %v873_v16, %v862_v18  ;;  %v901_v16 = vrot.slane %v252_v5, %v2512_v28 }
 0x37e   :  { %v918_v22 = vsel %vm255_vm2, %v2624_v21, -inf }
 0x37f   :  { %919 = vmax.xlane.f32.xlu0 %v918_v22 }
 0x380   :  { %v402_v24 = vpop.f32.mrb[4].mxu1 }
 0x381   :  { %v863_v25 = vmul.f32 0.35355338, %v402_v24  ;;  %v2154_v27 = vpop.f32.mrb[5].mxu1 }
 0x383   :  { %v2629_v30 = vadd.f32 %v877_v23, %v863_v25 }
 0x385   :  { %v921_v32 = vsel %vm255_vm2, %v2629_v30, -inf }
 0x386   :  { %922 = vmax.xlane.f32.xlu1 %v921_v32 }
 0x3e3   :  { %v554_v40 = vpop.f32.mrb[6].mxu1 }
 0x3e4   :  { %v865_v42 = vmul.f32 0.35355338, %v554_v40  ;;  %v478_v44 = vpop.f32.mrb[0].mxu0  ;;  %v2164_v46 = vpop.f32.mrb[7].mxu1 }
 0x3e5   :  { %v864_v55 = vmul.f32 0.35355338, %v478_v44  ;;  %v2159_v56 = vpop.f32.mrb[1].mxu0 }
 0x3e6   :  { %v913_v57 = vadd.f32 %v885_v38, %v865_v42 }
 0x3e7   :  { %v912_v63 = vadd.f32 %v881_v53, %v864_v55 }
 0x3e8   :  { %v630_v61 = vpop.f32.mrb[2].mxu0  ;;  %v927_v62 = vsel %vm255_vm2, %v913_v57, -inf }
 0x3e9   :  { %v866_v2 = vmul.f32 0.35355338, %v630_v61  ;;  %928 = vmax.xlane.f32.xlu0 %v927_v62  ;;  %v2169_v3 = vpop.f32.mrb[3].mxu0  ;;  %v924_v12 = vsel %vm255_vm2, %v912_v63, -inf }
 0x3eb   :  { %v706_v6 = vpop.f32.mrb[8].mxu1  ;;  %v914_v7 = vadd.f32 %v889_v59, %v866_v2 }
 0x3ec   :  { %v867_v9 = vmul.f32 0.35355338, %v706_v6  ;;  %v2174_v10 = vpop.f32.mrb[9].mxu1  ;;  %v782_v11 = vpop.f32.mrb[4].mxu0 }
 0x3ed   :  { %v868_v13 = vmul.f32 0.35355338, %v782_v11  ;;  %925 = vmax.xlane.f32.xlu0 %v924_v12  ;;  %v2179_v14 = vpop.f32.mrb[5].mxu0  ;;  %v930_v23 = vsel %vm255_vm2, %v914_v7, -inf }
 0x3ee   :  { %v915_v15 = vadd.f32 %v893_v4, %v867_v9 }
 0x3ef   :  { %v858_v17 = vpop.f32.mrb[10].mxu1  ;;  %v916_v18 = vadd.f32 %v897_v8, %v868_v13 }
 0x3f0   :  { %v869_v19 = vmul.f32 0.35355338, %v858_v17  ;;  %v2184_v20 = vpop.f32.mrb[11].mxu1  ;;  %v933_v22 = vsel %vm255_vm2, %v915_v15, -inf }
 0x3f1   :  { %934 = vmax.xlane.f32.xlu1 %v933_v22  ;;  %931 = vmax.xlane.f32.xlu0 %v930_v23  ;;  %v936_v27 = vsel %vm255_vm2, %v916_v18, -inf }
 0x3f2   :  { %v917_v24 = vadd.f32 %v901_v16, %v869_v19 }
 0x3f4   :  { %v939_v25 = vsel %vm255_vm2, %v917_v24, -inf }
 0x3f5   :  { %940 = vmax.xlane.f32.xlu1 %v939_v25  ;;  %937 = vmax.xlane.f32.xlu0 %v936_v27 }
 0x406   :  { %1082 = vrot.lane.b32.xlu1 %v2541_v45, %s2426_s1 }
 0x40a   :  { %1158 = vrot.lane.b32.xlu1 %v2556_v49, %s2426_s1 }
 0x40b   :  { %1006 = vrot.lane.b32.xlu0 %v2543_v47, %s2426_s1 }
 0x40c   :  { %v920_v28 = vpop.xlane.xlu0 %919 }
 0x40d   :  { %v942_v32 = vsub.f32 %v2624_v21, %v920_v28 }
 0x40e   :  { %1234 = vrot.lane.b32.xlu1 %v2553_v48, %s2426_s1 }
 0x40f   :  { %1310 = vrot.lane.b32.xlu0 %v2559_v50, %s2426_s1  ;;  %v950_v33 = vmul.f32 1.442695, %v942_v32 }
 0x411   :  { %2324 = vpow2.f32 %v950_v33 }
 0x412   :  { %1386 = vrot.lane.b32.xlu1 %v2564_v52, %s2426_s1 }
 0x413   :  { %v923_v45 = vpop.xlane.xlu1 %922 }
 0x414   :  { %v943_v49 = vsub.f32 %v2629_v30, %v923_v45 }
 0x416   :  { %v952_v35 = vmul.f32 1.442695, %v943_v49 }
 0x418   :  { %2326 = vpow2.f32 %v952_v35 }
 0x41b   :  { %v2659_v47 = vpop.eup %2324 }
 0x41c   :  { %v966_v48 = vsel %vm255_vm2, %v2659_v47, 0.0 }
 0x422   :  { %v2663_v50 = vpop.eup %2326 }
 0x423   :  { %v969_v52 = vsel %vm255_vm2, %v2663_v50, 0.0 }
 0x42e   :  { %967 = vadd.xlane.f32.xlu0 %v966_v48 }
 0x436   :  { %970 = vadd.xlane.f32.xlu1 %v969_v52 }
 0x476   :  { %v929_v21 = vpop.xlane.xlu0 %928 }
 0x477   :  { %v945_v36 = vsub.f32 %v913_v57, %v929_v21 }
 0x479   :  { %v956_v37 = vmul.f32 1.442695, %v945_v36 }
 0x47a   :  { %v926_v38 = vpop.xlane.xlu0 %925 }
 0x47b   :  { %2328 = vpow2.f32 %v956_v37  ;;  %v944_v30 = vsub.f32 %v912_v63, %v926_v38 }
 0x47d   :  { %v954_v39 = vmul.f32 1.442695, %v944_v30 }
 0x47e   :  { %v935_v40 = vpop.xlane.xlu1 %934  ;;  %v932_v41 = vpop.xlane.xlu0 %931 }
 0x47f   :  { %2330 = vpow2.f32 %v954_v39  ;;  %v947_v42 = vsub.f32 %v915_v15, %v935_v40  ;;  %v946_v44 = vsub.f32 %v914_v7, %v932_v41 }
 0x481   :  { %v960_v46 = vmul.f32 1.442695, %v947_v42  ;;  %v958_v53 = vmul.f32 1.442695, %v946_v44  ;;  %v1646_v44 = vld [vmem:[%s2839_s3] sm:$0xff] }
 0x482   :  { %v941_v55 = vpop.xlane.xlu1 %940  ;;  %v938_v56 = vpop.xlane.xlu0 %937 }
 0x483   :  { %2332 = vpow2.f32 %v960_v46  ;;  %v949_v58 = vsub.f32 %v917_v24, %v941_v55  ;;  %v948_v59 = vsub.f32 %v916_v18, %v938_v56  ;;  %v1647_v46 = vld [vmem:[%s2839_s3 + $0x8] sm:$0xff]  ;;  %v1649_v55 = vld [vmem:[%s2839_s3 + $0x18] sm:$0xff] }
 0x484   :  { %2334 = vpow2.f32 %v958_v53  ;;  %v2274_v53 = vpack.c.bf16 %v1647_v46, %v1646_v44 }
 0x485   :  { %v2329_v60 = vpop.eup %2328  ;;  %v964_v57 = vmul.f32 1.442695, %v949_v58  ;;  %v962_v61 = vmul.f32 1.442695, %v948_v59 }
 0x486   :  { %v1083_v62 = vpop.permute.xlu1 %1082  ;;  %v1007_v2 = vpop.permute.xlu0 %1006  ;;  %v975_v63 = vsel %vm255_vm2, %v2329_v60, 0.0 }
 0x487   :  { %2336 = vpow2.f32 %v964_v57  ;;  %2191 = vmatpush3.msra.mxu1 %v1083_v62  ;;  %976 = vadd.xlane.f32.xlu1 %v975_v63 }
 0x488   :  { %2338 = vpow2.f32 %v962_v61  ;;  %2186 = vmatpush3.msra.mxu0 %v1007_v2  ;;  %2200 = vmatprep.subr.mxu1 %v2419_v43 }
 0x489   :  { %v2331_v3 = vpop.eup %2330  ;;  %2195 = vmatprep.subr.mxu0 %v2419_v43 }
 0x48a   :  { %v972_v4 = vsel %vm255_vm2, %v2331_v3, 0.0  ;;  %v1159_v13 = vpop.permute.xlu1 %1158  ;;  %v1311_v14 = vpop.permute.xlu0 %1310 }
 0x48b   :  { %973 = vadd.xlane.f32.xlu0 %v972_v4 }
 0x48d   :  { %v2333_v5 = vpop.eup %2332 }
 0x48e   :  { %v2335_v6 = vpop.eup %2334  ;;  %v981_v7 = vsel %vm255_vm2, %v2333_v5, 0.0  ;;  %v1235_v15 = vpop.permute.xlu1 %1234 }
 0x48f   :  { %982 = vadd.xlane.f32.xlu1 %v981_v7  ;;  %v978_v8 = vsel %vm255_vm2, %v2335_v6, 0.0 }
 0x490   :  { %979 = vadd.xlane.f32.xlu0 %v978_v8 }
 0x491   :  { %v2673_v9 = vpop.eup %2336 }
 0x492   :  { %v2675_v10 = vpop.eup %2338  ;;  %v987_v11 = vsel %vm255_vm2, %v2673_v9, 0.0  ;;  %v1387_v17 = vpop.permute.xlu1 %1386 }
 0x493   :  { %988 = vadd.xlane.f32.xlu1 %v987_v11  ;;  %v984_v12 = vsel %vm255_vm2, %v2675_v10, 0.0 }
 0x494   :  { %985 = vadd.xlane.f32.xlu0 %v984_v12 }
 0x4a4   :  { %1538 = vrot.lane.b32.xlu1 %v2570_v54, %s2426_s1 }
 0x4aa   :  { %1462 = vrot.lane.b32.xlu0 %v2561_v51, %s2426_s1 }
 0x4bb   :  { %v968_v16 = vpop.xlane.xlu0 %967 }
 0x4bc   :  { %2340 = vrcp.f32 %v968_v16 }
 0x4c3   :  { %v971_v18 = vpop.xlane.xlu1 %970 }
 0x4c4   :  { %2342 = vrcp.f32 %v971_v18 }
 0x4c6   :  { %v2341_v19 = vpop.eup %2340 }
 0x4c7   :  { %v998_v20 = vmul.f32 %v2341_v19, %v2659_v47  ;;  %v1652_v19 = vsub.s32 5, %v2509_v26 }
 0x4c9   :  { %2188 = vmatmul.mubr.msk.f32.vlgmr.msra.gmra.mrb[6].mxu0 %vm255_vm2, %v998_v20  ;;  %v1653_v20 = vrot.slane %v2517_v29, %v1652_v19 }
 0x4ca   :  { %2196 = vmatpush3.msra.mxu0 %v1159_v13  ;;  %2197 = vmatprep.mubr.msk.f32.mxu0 %vm2420_vm1, %v2419_v43 }
 0x4cb   :  { %2205 = vmatprep.subr.mxu0 %v2419_v43 }
 0x4ce   :  { %v2343_v51 = vpop.eup %2342 }
 0x4cf   :  { %v999_v54 = vmul.f32 %v2343_v51, %v2663_v50 }
 0x4d1   :  { %2193 = vmatmul.mubr.msk.f32.vlgmr.msra.gmra.mrb[12].mxu1 %vm255_vm2, %v999_v54 }
 0x4d2   :  { %2201 = vmatpush3.msra.mxu1 %v1235_v15  ;;  %2202 = vmatprep.mubr.msk.f32.mxu1 %vm2420_vm1, %v2419_v43 }
 0x4d3   :  { %2210 = vmatprep.subr.mxu1 %v2419_v43 }
 0x514   :  { %v977_v22 = vpop.xlane.xlu1 %976 }
 0x515   :  { %2344 = vrcp.f32 %v977_v22 }
 0x518   :  { %v974_v23 = vpop.xlane.xlu0 %973 }
 0x519   :  { %2346 = vrcp.f32 %v974_v23 }
 0x51c   :  { %v983_v24 = vpop.xlane.xlu1 %982 }
 0x51d   :  { %2348 = vrcp.f32 %v983_v24  ;;  %v980_v25 = vpop.xlane.xlu0 %979 }
 0x51e   :  { %2350 = vrcp.f32 %v980_v25 }
 0x51f   :  { %v2345_v27 = vpop.eup %2344 }
 0x520   :  { %v1001_v28 = vmul.f32 %v2345_v27, %v2329_v60  ;;  %v989_v32 = vpop.xlane.xlu1 %988 }
 0x521   :  { %2352 = vrcp.f32 %v989_v32  ;;  %v986_v33 = vpop.xlane.xlu0 %985 }
 0x522   :  { %2354 = vrcp.f32 %v986_v33  ;;  %2203 = vmatmul.mubr.msk.f32.vlgmr.msra.gmra.mrb[14].mxu1 %vm255_vm2, %v1001_v28 }
 0x523   :  { %v2347_v45 = vpop.eup %2346  ;;  %2211 = vmatpush3.msra.mxu1 %v1387_v17  ;;  %2212 = vmatprep.mubr.msk.f32.mxu1 %vm2420_vm1, %v2419_v43 }
 0x524   :  { %v1000_v49 = vmul.f32 %v2347_v45, %v2331_v3  ;;  %2220 = vmatprep.subr.mxu1 %v2419_v43  ;;  %v1539_v52 = vpop.permute.xlu1 %1538 }
 0x525   :  { %v1463_v36 = vpop.permute.xlu0 %1462 }
 0x526   :  { %2198 = vmatmul.mubr.msk.f32.vlgmr.msra.gmra.mrb[8].mxu0 %vm255_vm2, %v1000_v49 }
 0x527   :  { %v2349_v35 = vpop.eup %2348  ;;  %2206 = vmatpush3.msra.mxu0 %v1311_v14  ;;  %2207 = vmatprep.mubr.msk.f32.mxu0 %vm2420_vm1, %v2419_v43 }
 0x528   :  { %v2351_v47 = vpop.eup %2350  ;;  %v1003_v48 = vmul.f32 %v2349_v35, %v2333_v5  ;;  %2215 = vmatprep.subr.mxu0 %v2419_v43 }
 0x529   :  { %v1002_v50 = vmul.f32 %v2351_v47, %v2335_v6 }
 0x52a   :  { %2213 = vmatmul.mubr.msk.f32.vlgmr.msra.gmra.mrb[16].mxu1 %vm255_vm2, %v1003_v48 }
 0x52b   :  { %v2353_v21 = vpop.eup %2352  ;;  %2208 = vmatmul.mubr.msk.f32.vlgmr.msra.gmra.mrb[10].mxu0 %vm255_vm2, %v1002_v50  ;;  %2221 = vmatpush3.msra.mxu1 %v1539_v52 }
 0x52c   :  { %v2355_v37 = vpop.eup %2354  ;;  %v1005_v38 = vmul.f32 %v2353_v21, %v2673_v9  ;;  %2216 = vmatpush3.msra.mxu0 %v1463_v36  ;;  %2217 = vmatprep.mubr.msk.f32.mxu0 %vm2420_vm1, %v2419_v43 }
 0x52d   :  { %v1004_v30 = vmul.f32 %v2355_v37, %v2675_v10  ;;  %2222 = vmatprep.mubr.msk.f32.mxu1 %vm2420_vm1, %v2419_v43  ;;  %2275 = vmatprep.subr.bf16.mxu0 %v2274_v53  ;;  %v1648_v43 = vld [vmem:[%s2839_s3 + $0x10] sm:$0xff]  ;;  %s2428_s3 = smov 24  }
 0x52e   :  { %2223 = vmatmul.mubr.msk.f32.vlgmr.msra.gmra.mrb[18].mxu1 %vm255_vm2, %v1005_v38  ;;  %v2278_v56 = vpack.c.bf16 %v1649_v55, %v1648_v43 }
 0x52f   :  { %2218 = vmatmul.mubr.msk.f32.vlgmr.msra.gmra.mrb[12].mxu0 %vm255_vm2, %v1004_v30 }
 0x530   :  { %2277 = vmatpush3.bf16.msra.mxu0 %v2274_v53 }
 0x531   :  { %2279 = vmatprep.subr.bf16.mxu0 %v2278_v56 }
 0x534   :  { %2281 = vmatpush3.bf16.msra.mxu0 %v2278_v56 }
 0x59c   :  { %v1078_v39 = vpop.f32.mrb[6].mxu0 }
 0x59d   :  { %v2189_v40 = vpop.f32.mrb[7].mxu0 }
 0x5a4   :  { %v1154_v41 = vpop.f32.mrb[12].mxu1 }
 0x5a5   :  { %v2194_v42 = vpop.f32.mrb[13].mxu1 }
 0x5f5   :  { %v1306_v58 = vpop.f32.mrb[14].mxu1 }
 0x5f6   :  { %1618 = vrot.lane.b32.xlu1 %v1306_v58, %s2418_s12  ;;  %v2204_v59 = vpop.f32.mrb[15].mxu1 }
 0x5f9   :  { %v1230_v60 = vpop.f32.mrb[8].mxu0 }
 0x5fa   :  { %1616 = vrot.lane.b32.xlu0 %v1230_v60, %s2418_s12  ;;  %v2199_v57 = vpop.f32.mrb[9].mxu0 }
 0x5fd   :  { %v1458_v61 = vpop.f32.mrb[16].mxu1 }
 0x5fe   :  { %v1382_v62 = vpop.f32.mrb[10].mxu0  ;;  %1626 = vrot.lane.b32.xlu1 %v1458_v61, %s2427_s0  ;;  %v2214_v2 = vpop.f32.mrb[17].mxu1 }
 0x5ff   :  { %1624 = vrot.lane.b32.xlu0 %v1382_v62, %s2427_s0  ;;  %v2209_v63 = vpop.f32.mrb[11].mxu0 }
 0x601   :  { %v1610_v3 = vpop.f32.mrb[18].mxu1 }
 0x602   :  { %v1534_v4 = vpop.f32.mrb[12].mxu0  ;;  %1634 = vrot.lane.b32.xlu1 %v1610_v3, %s2428_s3  ;;  %v2224_v5 = vpop.f32.mrb[19].mxu1  ;;  %v1805_v3 = vld [vmem:[%s2840_s4] sm:$0xff] }
 0x603   :  { %1632 = vrot.lane.b32.xlu0 %v1534_v4, %s2428_s3  ;;  %v2219_v6 = vpop.f32.mrb[13].mxu0  ;;  %v1806_v4 = vld [vmem:[%s2840_s4 + $0x8] sm:$0xff] }
 0x604   :  { %v2282_v5 = vpack.c.bf16 %v1806_v4, %v1805_v3  ;;  %v1807_v6 = vld [vmem:[%s2840_s4 + $0x10] sm:$0xff] }
 0x606   :  { %2283 = vmatprep.subr.bf16.mxu1 %v2282_v5 }
 0x607   :  { %2285 = vmatpush3.bf16.msra.mxu1 %v2282_v5 }
 0x668   :  { %v1619_v7 = vpop.permute.xlu1 %1618 }
 0x669   :  { %v1639_v11 = vsel %vm255_vm2, %v1154_v41, %v1619_v7  ;;  %v1808_v7 = vld [vmem:[%s2840_s4 + $0x18] sm:$0xff] }
 0x66c   :  { %v1617_v8 = vpop.permute.xlu0 %1616 }
 0x66d   :  { %v1638_v12 = vsel %vm255_vm2, %v1078_v39, %v1617_v8  ;;  %v2286_v8 = vpack.c.bf16 %v1808_v7, %v1807_v6 }
 0x66f   :  { %2287 = vmatprep.subr.bf16.mxu1 %v2286_v8 }
 0x670   :  { %v1627_v9 = vpop.permute.xlu1 %1626  ;;  %2289 = vmatpush3.bf16.msra.mxu1 %v2286_v8 }
 0x671   :  { %v1625_v10 = vpop.permute.xlu0 %1624  ;;  %v1642_v13 = vsel %vm1640_vm6, %v1639_v11, %v1627_v9  ;;  %v1896_v9 = vld [vmem:[%s2841_s5] sm:$0xff]  ;;  %v1898_v11 = vld [vmem:[%s2841_s5 + $0x10] sm:$0xff] }
 0x672   :  { %v1641_v15 = vsel %vm1640_vm6, %v1638_v12, %v1625_v10  ;;  %v1897_v10 = vld [vmem:[%s2841_s5 + $0x8] sm:$0xff] }
 0x673   :  { %v2290_v12 = vpack.c.bf16 %v1897_v10, %v1896_v9 }
 0x674   :  { %v1635_v14 = vpop.permute.xlu1 %1634 }
 0x675   :  { %v1645_v16 = vsel %vm1643_vm7, %v1642_v13, %v1635_v14  ;;  %v1633_v17 = vpop.permute.xlu0 %1632  ;;  %v1899_v13 = vld [vmem:[%s2841_s5 + $0x18] sm:$0xff]  ;;  %2291 = vmatprep.subr.bf16.mxu0 %v2290_v12 }
 0x676   :  { %v1644_v18 = vsel %vm1643_vm7, %v1641_v15, %v1633_v17  ;;  %v2294_v14 = vpack.c.bf16 %v1899_v13, %v1898_v11  ;;  %v1900_v15 = vld [vmem:[%s2841_s5 + $0x20] sm:$0xff] }
 0x677   :  { %2233 = vmatprep.mubr.msk.f32.mxu0 %vm44_vm0, %v1644_v18 }
 0x678   :  { %2234 = vmatmul.mubr.msk.f32.vlgmr.msra.gmra.mrb[14].mxu0 %vm44_vm0, %v1645_v16  ;;  %v1901_v16 = vld [vmem:[%s2841_s5 + $0x28] sm:$0xff] }
 0x679   :  { %2293 = vmatpush3.bf16.msra.mxu0 %v2290_v12  ;;  %v2298_v17 = vpack.c.bf16 %v1901_v16, %v1900_v15 }
 0x67a   :  { %2295 = vmatprep.subr.bf16.mxu0 %v2294_v14 }
 0x67d   :  { %2297 = vmatpush3.bf16.msra.mxu0 %v2294_v14 }
 0x67e   :  { %2299 = vmatprep.subr.bf16.mxu0 %v2298_v17 }
 0x681   :  { %2301 = vmatpush3.bf16.msra.mxu0 %v2298_v17 }
 0x74b   :  { %v2235_v51 = vpop.f32.mrb[14].mxu0 }
 0x74c   :  { %v1732_v54 = vadd.f32 %v2235_v51, %v1653_v20  ;;  %v1726_v22 = vpop.f32.mrb[15].mxu0 }
 0x74d   :  { %v1727_v23 = vadd.f32 %v1726_v22, %v1653_v20 }
 0x74e   :  { %v1736_v24 = vadd.f32 %v1732_v54, %v2487_v1 }
 0x74f   :  { %v1735_v25 = vadd.f32 %v1727_v23, %v2485_v0  ;;  %v1795_v23 = vsub.s32 2, %v2509_v26 }
 0x750   :  { %v1740_v27 = vsel %vm44_vm0, %v1736_v24, 0.0 }
 0x751   :  { %1741 = vadd.xlane.f32.xlu1 %v1740_v27  ;;  %v1737_v28 = vsel %vm44_vm0, %v1735_v25, 0.0 }
 0x752   :  { %1738 = vadd.xlane.f32.xlu0 %v1737_v28 }
 0x7de   :  { %v1742_v32 = vpop.xlane.xlu1 %1741 }
 0x7df   :  { %v1744_v33 = vmul.f32 0.03125, %v1742_v32  ;;  %v1739_v45 = vpop.xlane.xlu0 %1738 }
 0x7e0   :  { %v1743_v49 = vmul.f32 0.03125, %v1739_v45 }
 0x7e1   :  { %v1746_v35 = vsub.f32 %v1736_v24, %v1744_v33  ;;  %v1801_v24 = vsub.s32 3, %v2509_v26 }
 0x7e2   :  { %v1745_v47 = vsub.f32 %v1735_v25, %v1743_v49  ;;  %v2788_v25 = vrot.slane %v2517_v29, %v1795_v23 }
 0x7e3   :  { %v1748_v52 = vmul.f32 %v1746_v35, %v1746_v35  ;;  %v2791_v32 = vrot.slane %v2517_v29, %v1801_v24 }
 0x7e4   :  { %v1747_v48 = vmul.f32 %v1745_v47, %v1745_v47 }
 0x7e5   :  { %v1752_v1 = vsel %vm44_vm0, %v1748_v52, 0.0  ;;  %v1903_v52 = vld [vmem:[%s2841_s5 + $0x38] sm:$0xff] }
 0x7e6   :  { %v1749_v50 = vsel %vm44_vm0, %v1747_v48, 0.0 }
 0x7e7   :  { %1750 = vadd.xlane.f32.xlu0 %v1749_v50  ;;  %v1902_v50 = vld [vmem:[%s2841_s5 + $0x30] sm:$0xff]  ;;  %s2429_s5 = smov [#allocation5]  }
 0x7e8   :  { %s2029_s14 = sshll.u32 %s2429_s5, 4  ;;  %s2030_s14 = int_to_ptr.vmem [resolvable:$true] %s2029_s14 }
 0x7e9   :  { %s2390_s0 = scalar_lea.vmem %s2030_s14, 256  ;;  %p2395_p9 = scmp.lt.s32.totalorder %s2030_s14, %s2030_s14 }
 0x7ea   :  { %p2391_p8 = scmp.ne.s32.totalorder %s2030_s14, %s2390_s0  ;;  %p2396_p10 = scmp.lt.s32.totalorder %s2390_s0, %s2390_s0 }
 0x7eb   :  { %1753 = vadd.xlane.f32.xlu0 %v1752_v1  ;;  %v2302_v1 = vpack.c.bf16 %v1903_v52, %v1902_v50 }
 0x7ec   :  { %p2397_p11 = por %p2396_p10, %p2395_p9 }
 0x7ed   :  { %2303 = vmatprep.subr.bf16.mxu0 %v2302_v1 }
 0x7ee   :  { %2305 = vmatpush3.bf16.msra.mxu0 %v2302_v1  ;;  %p2398_p12 = pnand %p2397_p11, %p2391_p8 }
 0x874   :  { %v1751_v0 = vpop.xlane.xlu0 %1750 }
 0x875   :  { %v1755_v21 = vmul.f32 0.03125, %v1751_v0  ;;  %v1811_v0 = vsub.s32 6, %v2509_v26 }
 0x877   :  { %v1757_v36 = vadd.f32 1e-05, %v1755_v21  ;;  %v1812_v21 = vrot.slane %v2517_v29, %v1811_v0 }
 0x878   :  { %v1754_v37 = vpop.xlane.xlu0 %1753 }
 0x879   :  { %2356 = vrsqrt.f32 %v1757_v36  ;;  %v1756_v38 = vmul.f32 0.03125, %v1754_v37 }
 0x87b   :  { %v1758_v30 = vadd.f32 1e-05, %v1756_v38 }
 0x87d   :  { %2358 = vrsqrt.f32 %v1758_v30 }
 0x883   :  { %v2357_v39 = vpop.eup %2356 }
 0x884   :  { %v1761_v40 = vmul.f32 %v2357_v39, %v1745_v47 }
 0x886   :  { %v1763_v41 = vmul.f32 %v1761_v40, %v2522_v31 }
 0x887   :  { %v2359_v42 = vpop.eup %2358 }
 0x888   :  { %v2741_v44 = vadd.f32 %v1763_v41, %v2525_v34  ;;  %v1762_v46 = vmul.f32 %v2359_v42, %v1746_v35  ;;  %v1906_v41 = vsub.s32 7, %v2509_v26 }
 0x88a   :  { %v1767_v53 = vsel %vm44_vm0, %v2741_v44, 0.0  ;;  %v1764_v43 = vmul.f32 %v1762_v46, %v2522_v31  ;;  %v1907_v42 = vrot.slane %v2517_v29, %v1906_v41 }
 0x88b   :  { %1768 = vadd.xlane.f32.xlu0 %v1767_v53 }
 0x88c   :  { %v2747_v55 = vadd.f32 %v1764_v43, %v2525_v34 }
 0x88e   :  { %v1770_v56 = vsel %vm44_vm0, %v2747_v55, 0.0 }
 0x88f   :  { %1771 = vadd.xlane.f32.xlu1 %v1770_v56 }
 0x918   :  { %v1769_v58 = vpop.xlane.xlu0 %1768 }
 0x919   :  { %v1773_v59 = vmul.f32 0.03125, %v1769_v58 }
 0x91b   :  { %v1775_v60 = vsub.f32 %v2741_v44, %v1773_v59 }
 0x91c   :  { %v1772_v57 = vpop.xlane.xlu1 %1771 }
 0x91d   :  { %v1774_v61 = vmul.f32 0.03125, %v1772_v57  ;;  %v1777_v62 = vmul.f32 %v1775_v60, %v1775_v60 }
 0x91f   :  { %v1776_v2 = vsub.f32 %v2747_v55, %v1774_v61  ;;  %v1779_v63 = vsel %vm44_vm0, %v1777_v62, 0.0 }
 0x920   :  { %1780 = vadd.xlane.f32.xlu0 %v1779_v63 }
 0x921   :  { %v1778_v31 = vmul.f32 %v1776_v2, %v1776_v2 }
 0x923   :  { %v1782_v34 = vsel %vm44_vm0, %v1778_v31, 0.0 }
 0x924   :  { %1783 = vadd.xlane.f32.xlu1 %v1782_v34 }
 0x9ad   :  { %v1781_v18 = vpop.xlane.xlu0 %1780 }
 0x9ae   :  { %v1785_v19 = vmul.f32 0.03125, %v1781_v18 }
 0x9b0   :  { %v1787_v20 = vadd.f32 1e-05, %v1785_v19 }
 0x9b1   :  { %v1784_v51 = vpop.xlane.xlu1 %1783 }
 0x9b2   :  { %2360 = vrsqrt.f32 %v1787_v20  ;;  %v1786_v54 = vmul.f32 0.03125, %v1784_v51 }
 0x9b4   :  { %v1788_v22 = vadd.f32 1e-05, %v1786_v54 }
 0x9b6   :  { %2362 = vrsqrt.f32 %v1788_v22 }
 0x9bc   :  { %v2361_v27 = vpop.eup %2360 }
 0x9bd   :  { %v1791_v28 = vmul.f32 %v2361_v27, %v1775_v60 }
 0x9bf   :  { %v1797_v33 = vmul.f32 %v2788_v25, %v1791_v28 }
 0x9c0   :  { %v2363_v45 = vpop.eup %2362 }
 0x9c1   :  { %v1792_v49 = vmul.f32 %v2363_v45, %v1776_v2  ;;  %v1803_v35 = vadd.f32 %v2791_v32, %v1797_v33 }
 0x9c3   :  { %2244 = vmatprep.mubr.msk.f32.mxu1 %vm44_vm0, %v1803_v35  ;;  %v1798_v47 = vmul.f32 %v2788_v25, %v1792_v49 }
 0x9c5   :  { %v1804_v48 = vadd.f32 %v2791_v32, %v1798_v47 }
 0x9c7   :  { %2245 = vmatmul.mubr.msk.f32.vlgmr.msra.gmra.mrb[20].mxu1 %vm44_vm0, %v1804_v48 }
 0xa9a   :  { %v2246_v36 = vpop.f32.mrb[20].mxu1 }
 0xa9b   :  { %v1891_v37 = vadd.f32 %v2246_v36, %v1812_v21  ;;  %v1885_v38 = vpop.f32.mrb[21].mxu1 }
 0xa9c   :  { %v1886_v30 = vadd.f32 %v1885_v38, %v1812_v21 }
 0xa9d   :  { %v1895_v40 = vmax.f32 %v1891_v37, 0.0 }
 0xa9e   :  { %v1894_v39 = vmax.f32 %v1886_v30, 0.0 }
 0xaa0   :  { %2263 = vmatprep.mubr.msk.f32.mxu0 %vm1908_vm8, %v1894_v39 }
 0xaa1   :  { %2264 = vmatmul.mubr.msk.f32.vlgmr.msra.gmra.mrb[16].mxu0 %vm1908_vm8, %v1895_v40 }
 0xb74   :  { %v2265_v46 = vpop.f32.mrb[16].mxu0 }
 0xb75   :  { %v1987_v53 = vadd.f32 %v2265_v46, %v1907_v42  ;;  %v1981_v43 = vpop.f32.mrb[17].mxu0 }
 0xb76   :  { %v1982_v56 = vadd.f32 %v1981_v43, %v1907_v42 }
 0xb77   :  { %v1991_v58 = vadd.f32 %v1987_v53, %v2747_v55 }
 0xb78   :  { %v1990_v59 = vadd.f32 %v1982_v56, %v2741_v44 }
 0xb79   :  { %v1995_v60 = vsel %vm44_vm0, %v1991_v58, 0.0 }
 0xb7a   :  { %1996 = vadd.xlane.f32.xlu1 %v1995_v60  ;;  %v1992_v57 = vsel %vm44_vm0, %v1990_v59, 0.0 }
 0xb7b   :  { %1993 = vadd.xlane.f32.xlu0 %v1992_v57 }
 0xc07   :  { %v1997_v61 = vpop.xlane.xlu1 %1996 }
 0xc08   :  { %v1999_v62 = vmul.f32 0.03125, %v1997_v61  ;;  %v1994_v2 = vpop.xlane.xlu0 %1993 }
 0xc09   :  { %v1998_v26 = vmul.f32 0.03125, %v1994_v2 }
 0xc0a   :  { %v2001_v63 = vsub.f32 %v1991_v58, %v1999_v62 }
 0xc0b   :  { %v2000_v29 = vsub.f32 %v1990_v59, %v1998_v26 }
 0xc0c   :  { %v2003_v31 = vmul.f32 %v2001_v63, %v2001_v63 }
 0xc0d   :  { %v2002_v34 = vmul.f32 %v2000_v29, %v2000_v29 }
 0xc0e   :  { %v2007_v3 = vsel %vm44_vm0, %v2003_v31, 0.0 }
 0xc0f   :  { %2008 = vadd.xlane.f32.xlu1 %v2007_v3  ;;  %v2004_v55 = vsel %vm44_vm0, %v2002_v34, 0.0 }
 0xc10   :  { %2005 = vadd.xlane.f32.xlu0 %v2004_v55 }
 0xc9c   :  { %v2009_v44 = vpop.xlane.xlu1 %2008 }
 0xc9d   :  { %v2011_v4 = vmul.f32 0.03125, %v2009_v44  ;;  %v2006_v5 = vpop.xlane.xlu0 %2005 }
 0xc9e   :  { %v2010_v6 = vmul.f32 0.03125, %v2006_v5 }
 0xc9f   :  { %v2013_v7 = vadd.f32 1e-05, %v2011_v4 }
 0xca0   :  { %v2012_v8 = vadd.f32 1e-05, %v2010_v6 }
 0xca1   :  { %2364 = vrsqrt.f32 %v2013_v7 }
 0xca2   :  { %2366 = vrsqrt.f32 %v2012_v8 }
 0xcab   :  { %v2365_v9 = vpop.eup %2364 }
 0xcac   :  { %v2367_v10 = vpop.eup %2366  ;;  %v2017_v11 = vmul.f32 %v2365_v9, %v2001_v63 }
 0xcad   :  { %v2016_v12 = vmul.f32 %v2367_v10, %v2000_v29 }
 0xcae   :  { %v2019_v13 = vmul.f32 %v2017_v11, %v2788_v25 }
 0xcaf   :  { %v2018_v14 = vmul.f32 %v2016_v12, %v2788_v25 }
 0xcb0   :  { %v2021_v15 = vadd.f32 %v2019_v13, %v2791_v32 }
 0xcb1   :  { %v2020_v16 = vadd.f32 %v2018_v14, %v2791_v32 }
 0xcb2   :  { %2023 = vst.msk [vmem:[#allocation5 + $0x8] sm:$0xff] %vm44_vm0, %v2021_v15 }
 0xcb3   :  { %2022 = vst.msk [vmem:[#allocation5] sm:$0xff] %vm44_vm0, %v2020_v16 }
 0xcb4   :  { %2401 = shalt.err (!%p2398_p12)
}
 0xcb5   :  { %s2402_s16 = scalar_lea.hbm %s2843_s7, 256 }
 0xcb6   :  { %p2403_p13 = scmp.ne.s32.totalorder %s2843_s7, %s2402_s16  ;;  %p2406_p0 = scmp.lt.u32.totalorder %s2402_s16, %s2843_s7 }
 0xcb8   :  { %p2408_p1 = pnand %p2406_p0, %p2403_p13 }
 0xcba   :  { %2411 = shalt.err (!%p2408_p1)
}
 0xcbb   :  { %2035 = dma.vmem_to_hbm [thread:$0]  %s2030_s14, 256, %s2843_s7, [#allocation4], %s2417_s11, %s2417_s11, %s2418_s12  }
 0xcbc   :  { %2414 = dma.done.wait [#allocation4], 256  }
 0xcbd   :  { %2415 = vsyncadd [#allocation4], 4294967040 }
 0xcbe   :  { %2039 = vsyncpa [#allocation3], 1 }
 0xcbf   :  { %2040 = vsyncpa [#allocation4], 1 }

</bundles_post_ra>
